<compile_context>
chip_gen: v7x
topology: tpu7x:2x2x1
jax: 0.10.0
libtpu: 0.0.40
codegen_flags: <defaults>
</compile_context>

<pallas_src>
import functools

import jax
import jax.numpy as jnp
from jax.experimental import pallas as pl
from jax.experimental.pallas import tpu as pltpu


def _round_up(x, m):
    return ((x + m - 1) // m) * m


def _vmem_capacity_bytes():
    try:
        info = pltpu.get_tpu_info()
        cap = getattr(info, "vmem_capacity_bytes", None)
        if cap:
            return int(cap)
    except Exception:
        pass
    return 64 * 1024 * 1024  # conservative default (v7x-sized)


def _choose_tiles(S, V, itemsize, vmem_cap):
    """Large power-of-two-ish tiles sized to the chip generation's VMEM."""
    tile_budget = (8 * 1024 * 1024) if vmem_cap >= 96 * 1024 * 1024 else (4 * 1024 * 1024)
    ts = min(512, _round_up(S, 8))
    tv = min(4096, _round_up(V, 128))
    # shrink the sequence tile first (keep the vocab sweep wide)
    while ts > 8 and ts * tv * itemsize > tile_budget:
        ts = max(8, (ts // 2) // 8 * 8)
    while tv > 128 and ts * tv * itemsize > tile_budget:
        tv = max(128, (tv // 2) // 128 * 128)
    # full-dim blocks are always legal; avoid blocks larger than the array
    if ts >= S:
        ts = S
    if tv >= V:
        tv = V
    return ts, tv


def perplexity_pallas(logits, labels, reduce=True, ts=None, tv=None):
    """logits: (B, S, V) float (f32 or bf16), labels: (B, S) int."""
    B, S, V = logits.shape
    itemsize = logits.dtype.itemsize
    vmem_cap = _vmem_capacity_bytes()

    if ts is None or tv is None:
        ats, atv = _choose_tiles(S, V, itemsize, vmem_cap)
        ts = ts if ts is not None else ats
        tv = tv if tv is not None else atv

    s_tiles = pl.cdiv(S, ts)
    v_tiles = pl.cdiv(V, tv)
    s_pad = s_tiles * ts

    # Shift applied to the tiny labels tensor only: shifted[:, i] = labels[:, i+1],
    # last position (and any S padding) = -100 so those logit rows are ignored.
    shifted = jnp.concatenate(
        [labels[:, 1:].astype(jnp.int32),
         jnp.full((B, 1), -100, dtype=jnp.int32)], axis=1)
    if s_pad != S:
        shifted = jnp.pad(shifted, ((0, 0), (0, s_pad - S)), constant_values=-100)
    shifted = shifted.reshape(B, s_pad, 1)

    vocab_ragged = (V % tv) != 0

    def kernel(logits_ref, labels_ref, loss_ref, cnt_ref, m_sc, l_sc, ll_sc):
        v = pl.program_id(2)
        nv = pl.num_programs(2)

        # Per-(b, s-tile) online-LSE state: reset at the first vocab tile.
        @pl.when(v == 0)
        def _():
            m_sc[...] = jnp.full_like(m_sc, -jnp.inf)
            l_sc[...] = jnp.zeros_like(l_sc)
            ll_sc[...] = jnp.zeros_like(ll_sc)

        lg = logits_ref[0]            # (ts, tv) native dtype (bf16 or f32)
        lb = labels_ref[0]            # (ts, 1) int32, -100 = ignore

        col = jax.lax.broadcasted_iota(jnp.int32, lg.shape, 1)

        if vocab_ragged:
            # Mask lanes past the real vocab with a large NEGATIVE FINITE value
            # (not -inf) so exp(m_old - m_new) never hits inf - inf.
            lanes_valid = col < (V - v * tv)
            lg = jnp.where(lanes_valid, lg, jnp.asarray(-1e30, lg.dtype))

        # One-hot gather of the label logit. Compare against the tile-local label
        # index (a (ts,1) subtraction) instead of offsetting the full iota.
        labels_local = lb - v * tv
        onehot = col == labels_local
        ll_sc[...] += jnp.sum(jnp.where(onehot, lg, jnp.zeros_like(lg)),
                              axis=-1, keepdims=True).astype(jnp.float32)

        # Streaming (online) log-sum-exp over the vocab axis; exp path in f32.
        tile_max = jnp.max(lg, axis=-1, keepdims=True).astype(jnp.float32)
        m_prev = m_sc[...]
        m_new = jnp.maximum(m_prev, tile_max)
        p_sum = jnp.sum(jnp.exp(lg.astype(jnp.float32) - m_new),
                        axis=-1, keepdims=True)
        l_sc[...] = l_sc[...] * jnp.exp(m_prev - m_new) + p_sum
        m_sc[...] = m_new

        # End of vocab sweep: emit per-(b, s-tile) partial loss sum & valid count.
        @pl.when(v == nv - 1)
        def _():
            lse = m_sc[...] + jnp.log(l_sc[...])            # (ts, 1)
            token_loss = lse - ll_sc[...]                   # (ts, 1)
            valid = lb != -100                              # (ts, 1) bool
            loss_val = jnp.sum(jnp.where(valid, token_loss, 0.0))
            cnt_val = jnp.sum(jnp.where(valid, 1.0, 0.0))
            loss_ref[...] = jnp.full(loss_ref.shape, loss_val, dtype=jnp.float32)
            cnt_ref[...] = jnp.full(cnt_ref.shape, cnt_val, dtype=jnp.float32)

    tile_bytes = ts * tv * itemsize
    vmem_limit = int(min(max(32 * 1024 * 1024, 8 * tile_bytes),
                         max(vmem_cap - 16 * 1024 * 1024, 32 * 1024 * 1024)))

    cost = pl.CostEstimate(
        flops=5 * B * S * V,
        transcendentals=B * S * V,
        bytes_accessed=(logits.size * itemsize + shifted.size * 4
                        + 2 * B * s_tiles * 8 * 128 * 4),
    )

    out_shape = (jax.ShapeDtypeStruct((B, s_tiles, 8, 128), jnp.float32),
                 jax.ShapeDtypeStruct((B, s_tiles, 8, 128), jnp.float32))

    loss_part, cnt_part = pl.pallas_call(
        kernel,
        out_shape=out_shape,
        grid_spec=pltpu.PrefetchScalarGridSpec(
            num_scalar_prefetch=0,
            grid=(B, s_tiles, v_tiles),
            in_specs=[
                pl.BlockSpec((1, ts, tv), lambda b, s, v: (b, s, v)),
                pl.BlockSpec((1, ts, 1), lambda b, s, v: (b, s, 0)),
            ],
            out_specs=[
                pl.BlockSpec((1, 1, 8, 128), lambda b, s, v: (b, s, 0, 0)),
                pl.BlockSpec((1, 1, 8, 128), lambda b, s, v: (b, s, 0, 0)),
            ],
            scratch_shapes=[
                pltpu.VMEM((ts, 1), jnp.float32),   # running max
                pltpu.VMEM((ts, 1), jnp.float32),   # running sum-exp
                pltpu.VMEM((ts, 1), jnp.float32),   # accumulated label logit
            ],
        ),
        compiler_params=pltpu.CompilerParams(
            # B and S tiles are independent (both TCs busy even with B == 1);
            # V carries the online-LSE scratch -> arbitrary (innermost).
            dimension_semantics=("parallel", "parallel", "arbitrary"),
            vmem_limit_bytes=vmem_limit,
        ),
        cost_estimate=cost,
    )(logits, shifted)

    # Tiny wrapper-side reduction over the per-(b, s-tile) partials.
    loss_sum = loss_part[:, :, 0, 0].sum(axis=1)
    cnt_sum = cnt_part[:, :, 0, 0].sum(axis=1)
    per_batch = jnp.exp(loss_sum / cnt_sum)   # 0/0 -> NaN, same as torch
    if reduce:
        return jnp.mean(per_batch)
    return per_batch


def _reference(logits, labels, reduce=True):
    # pure-JAX reference mirroring torch CrossEntropyLoss(ignore_index=-100)
    shift_logits = logits[:, :-1, :].astype(jnp.float32)
    shift_labels = labels[:, 1:].astype(jnp.int32)
    logp = jax.nn.log_softmax(shift_logits, axis=-1)
    idx = jnp.clip(shift_labels, 0)[..., None]
    nll = -jnp.take_along_axis(logp, idx, axis=-1)[..., 0]
    valid = (shift_labels != -100).astype(jnp.float32)
    loss = jnp.sum(nll * valid, axis=-1) / jnp.sum(valid, axis=-1)
    ppl = jnp.exp(loss)
    return jnp.mean(ppl) if reduce else ppl


if __name__ == "__main__":
    key = jax.random.PRNGKey(0)
    k1, k2, k3, k4 = jax.random.split(key, 4)

    # Case 1: small aligned shape, single tile per batch element, reduce=True.
    B, S, V = 2, 8, 128
    logits = jax.random.normal(k1, (B, S, V), dtype=jnp.float32)
    labels = jax.random.randint(k2, (B, S), 0, V, dtype=jnp.int32)
    out = jax.block_until_ready(perplexity_pallas(logits, labels, reduce=True))
    ref = _reference(logits, labels, reduce=True)
    assert jnp.allclose(out, ref, rtol=1e-4, atol=1e-4), (out, ref)

    # Case 2: ragged S and V (S=18, V=200 with ts=8, tv=128 -> masked last tiles),
    # ignore_index tokens, reduce=False (per-sample perplexity).
    B2, S2, V2 = 2, 18, 200
    logits2 = jax.random.normal(k3, (B2, S2, V2), dtype=jnp.float32)
    labels2 = jax.random.randint(k4, (B2, S2), 0, V2, dtype=jnp.int32)
    labels2 = labels2.at[:, -3:].set(-100)  # some ignored tokens
    out2 = jax.block_until_ready(
        perplexity_pallas(logits2, labels2, reduce=False, ts=8, tv=128))
    ref2 = _reference(logits2, labels2, reduce=False)
    assert jnp.allclose(out2, ref2, rtol=1e-4, atol=1e-4), (out2, ref2)

    # Case 3: bf16 logits path (bf16 DMA + bf16 compare/max, f32 exp/accumulate).
    logits3 = logits2.astype(jnp.bfloat16)
    out3 = jax.block_until_ready(
        perplexity_pallas(logits3, labels2, reduce=False, ts=8, tv=128))
    ref3 = _reference(logits3, labels2, reduce=False)
    assert jnp.allclose(out3, ref3, rtol=1e-3, atol=1e-3), (out3, ref3)

    print("KERNEL_OK")
</pallas_src>

<mosaic_0001>
module attributes {stable_mosaic.version = 11 : i64} {
  func.func @kernel(%arg0: i32, %arg1: i32, %arg2: i32, %arg3: memref<1x8x128xf32, #tpu.memory_space<vmem>>, %arg4: memref<1x8x1xi32, #tpu.memory_space<vmem>>, %arg5: memref<1x1x8x128xf32, #tpu.memory_space<vmem>>, %arg6: memref<1x1x8x128xf32, #tpu.memory_space<vmem>>, %arg7: memref<8x1xf32, #tpu.memory_space<vmem>>, %arg8: memref<8x1xf32, #tpu.memory_space<vmem>>, %arg9: memref<8x1xf32, #tpu.memory_space<vmem>>) attributes {dimension_semantics = [#tpu.dimension_semantics<parallel>, #tpu.dimension_semantics<parallel>, #tpu.dimension_semantics<arbitrary>], iteration_bounds = array<i64: 2, 1, 1>, scalar_prefetch = 0 : i64, scratch_operands = 3 : i64, tpu.core_type = #tpu.core_type<tc>, window_params = [{transform_indices = @transform_0, window_bounds = array<i64: 1, 8, 128>}, {transform_indices = @transform_1, window_bounds = array<i64: 1, 8, 1>}, {transform_indices = @transform_2, window_bounds = array<i64: 1, 1, 8, 128>}, {transform_indices = @transform_3, window_bounds = array<i64: 1, 1, 8, 128>}]} {
    %c0_i32 = arith.constant 0 : i32
    %0 = arith.cmpi eq, %arg2, %c0_i32 : i32
    %1 = arith.extui %0 : i1 to i32
    %c0_i32_0 = arith.constant 0 : i32
    %2 = arith.cmpi ne, %1, %c0_i32_0 : i32
    scf.if %2 {
      %cst_23 = arith.constant 0xFF800000 : f32
      %39 = vector.broadcast %cst_23 : f32 to vector<8x1xf32>
      %c0_24 = arith.constant 0 : index
      %c0_25 = arith.constant 0 : index
      %40 = vector.load %arg7[%c0_24, %c0_25] : memref<8x1xf32, #tpu.memory_space<vmem>>, vector<8x1xf32>
      tpu.vector_store %arg7[%c0_24, %c0_25], %39 {strides = array<i32>} : memref<8x1xf32, #tpu.memory_space<vmem>>, vector<8x1xf32>,
      %cst_26 = arith.constant 0.000000e+00 : f32
      %41 = vector.broadcast %cst_26 : f32 to vector<8x1xf32>
      %c0_27 = arith.constant 0 : index
      %c0_28 = arith.constant 0 : index
      %42 = vector.load %arg8[%c0_27, %c0_28] : memref<8x1xf32, #tpu.memory_space<vmem>>, vector<8x1xf32>
      tpu.vector_store %arg8[%c0_27, %c0_28], %41 {strides = array<i32>} : memref<8x1xf32, #tpu.memory_space<vmem>>, vector<8x1xf32>,
      %cst_29 = arith.constant 0.000000e+00 : f32
      %43 = vector.broadcast %cst_29 : f32 to vector<8x1xf32>
      %c0_30 = arith.constant 0 : index
      %c0_31 = arith.constant 0 : index
      %44 = vector.load %arg9[%c0_30, %c0_31] : memref<8x1xf32, #tpu.memory_space<vmem>>, vector<8x1xf32>
      tpu.vector_store %arg9[%c0_30, %c0_31], %43 {strides = array<i32>} : memref<8x1xf32, #tpu.memory_space<vmem>>, vector<8x1xf32>,
    } else {
    }
    %c0 = arith.constant 0 : index
    %c0_1 = arith.constant 0 : index
    %c0_2 = arith.constant 0 : index
    %3 = vector.load %arg3[%c0, %c0_1, %c0_2] : memref<1x8x128xf32, #tpu.memory_space<vmem>>, vector<1x8x128xf32>
    %4 = vector.shape_cast %3 : vector<1x8x128xf32> to vector<8x128xf32>
    %c0_3 = arith.constant 0 : index
    %c0_4 = arith.constant 0 : index
    %c0_5 = arith.constant 0 : index
    %5 = vector.load %arg4[%c0_3, %c0_4, %c0_5] : memref<1x8x1xi32, #tpu.memory_space<vmem>>, vector<1x8x1xi32>
    %6 = vector.shape_cast %5 : vector<1x8x1xi32> to vector<8x1xi32>
    %7 = tpu.iota {dimensions = array<i32: 1>} : vector<8x128xi32>
    %c128_i32 = arith.constant 128 : i32
    %8 = arith.muli %arg2, %c128_i32 : i32
    %9 = vector.broadcast %8 : i32 to vector<8x1xi32>
    %10 = arith.subi %6, %9 : vector<8x1xi32>
    %11 = vector.broadcast %10 : vector<8x1xi32> to vector<8x128xi32>
    %12 = arith.cmpi eq, %7, %11 : vector<8x128xi32>
    %c0_6 = arith.constant 0 : index
    %c0_7 = arith.constant 0 : index
    %13 = vector.load %arg9[%c0_6, %c0_7] : memref<8x1xf32, #tpu.memory_space<vmem>>, vector<8x1xf32>
    %cst = arith.constant 0.000000e+00 : f32
    %14 = vector.broadcast %cst : f32 to vector<8x128xf32>
    %15 = arith.select %12, %4, %14 : vector<8x128xi1>, vector<8x128xf32>
    %cst_8 = arith.constant dense<0.000000e+00> : vector<8xf32>
    %16 = vector.multi_reduction <add>, %15, %cst_8 [1] : vector<8x128xf32> to vector<8xf32>
    %17 = vector.shape_cast %16 : vector<8xf32> to vector<8x1xf32>
    %18 = arith.addf %13, %17 : vector<8x1xf32>
    %c0_9 = arith.constant 0 : index
    %c0_10 = arith.constant 0 : index
    %19 = vector.load %arg9[%c0_9, %c0_10] : memref<8x1xf32, #tpu.memory_space<vmem>>, vector<8x1xf32>
    tpu.vector_store %arg9[%c0_9, %c0_10], %18 {strides = array<i32>} : memref<8x1xf32, #tpu.memory_space<vmem>>, vector<8x1xf32>,
    %cst_11 = arith.constant dense<0xFF800000> : vector<8xf32>
    %20 = vector.multi_reduction <maximumf>, %4, %cst_11 [1] : vector<8x128xf32> to vector<8xf32>
    %21 = vector.shape_cast %20 : vector<8xf32> to vector<8x1xf32>
    %c0_12 = arith.constant 0 : index
    %c0_13 = arith.constant 0 : index
    %22 = vector.load %arg7[%c0_12, %c0_13] : memref<8x1xf32, #tpu.memory_space<vmem>>, vector<8x1xf32>
    %23 = arith.maximumf %22, %21 : vector<8x1xf32>
    %24 = vector.broadcast %23 : vector<8x1xf32> to vector<8x128xf32>
    %25 = arith.subf %4, %24 : vector<8x128xf32>
    %26 = math.exp %25 : vector<8x128xf32>
    %cst_14 = arith.constant dense<0.000000e+00> : vector<8xf32>
    %27 = vector.multi_reduction <add>, %26, %cst_14 [1] : vector<8x128xf32> to vector<8xf32>
    %28 = vector.shape_cast %27 : vector<8xf32> to vector<8x1xf32>
    %c0_15 = arith.constant 0 : index
    %c0_16 = arith.constant 0 : index
    %29 = vector.load %arg8[%c0_15, %c0_16] : memref<8x1xf32, #tpu.memory_space<vmem>>, vector<8x1xf32>
    %30 = arith.subf %22, %23 : vector<8x1xf32>
    %31 = math.exp %30 : vector<8x1xf32>
    %32 = arith.mulf %29, %31 : vector<8x1xf32>
    %33 = arith.addf %32, %28 : vector<8x1xf32>
    %c0_17 = arith.constant 0 : index
    %c0_18 = arith.constant 0 : index
    %34 = vector.load %arg8[%c0_17, %c0_18] : memref<8x1xf32, #tpu.memory_space<vmem>>, vector<8x1xf32>
    tpu.vector_store %arg8[%c0_17, %c0_18], %33 {strides = array<i32>} : memref<8x1xf32, #tpu.memory_space<vmem>>, vector<8x1xf32>,
    %c0_19 = arith.constant 0 : index
    %c0_20 = arith.constant 0 : index
    %35 = vector.load %arg7[%c0_19, %c0_20] : memref<8x1xf32, #tpu.memory_space<vmem>>, vector<8x1xf32>
    tpu.vector_store %arg7[%c0_19, %c0_20], %23 {strides = array<i32>} : memref<8x1xf32, #tpu.memory_space<vmem>>, vector<8x1xf32>,
    %c0_i32_21 = arith.constant 0 : i32
    %36 = arith.cmpi eq, %arg2, %c0_i32_21 : i32
    %37 = arith.extui %36 : i1 to i32
    %c0_i32_22 = arith.constant 0 : i32
    %38 = arith.cmpi ne, %37, %c0_i32_22 : i32
    scf.if %38 {
      %c0_23 = arith.constant 0 : index
      %c0_24 = arith.constant 0 : index
      %39 = vector.load %arg7[%c0_23, %c0_24] : memref<8x1xf32, #tpu.memory_space<vmem>>, vector<8x1xf32>
      %c0_25 = arith.constant 0 : index
      %c0_26 = arith.constant 0 : index
      %40 = vector.load %arg8[%c0_25, %c0_26] : memref<8x1xf32, #tpu.memory_space<vmem>>, vector<8x1xf32>
      %41 = math.log %40 : vector<8x1xf32>
      %42 = arith.addf %39, %41 : vector<8x1xf32>
      %c0_27 = arith.constant 0 : index
      %c0_28 = arith.constant 0 : index
      %43 = vector.load %arg9[%c0_27, %c0_28] : memref<8x1xf32, #tpu.memory_space<vmem>>, vector<8x1xf32>
      %44 = arith.subf %42, %43 : vector<8x1xf32>
      %c-100_i32 = arith.constant -100 : i32
      %45 = vector.broadcast %c-100_i32 : i32 to vector<8x1xi32>
      %46 = arith.cmpi ne, %6, %45 : vector<8x1xi32>
      %cst_29 = arith.constant 0.000000e+00 : f32
      %47 = vector.broadcast %cst_29 : f32 to vector<8x1xf32>
      %48 = arith.select %46, %44, %47 : vector<8x1xi1>, vector<8x1xf32>
      %49 = vector.shape_cast %48 : vector<8x1xf32> to vector<1x8x1xf32>
      %cst_30 = arith.constant dense<0.000000e+00> : vector<1xf32>
      %50 = vector.multi_reduction <add>, %49, %cst_30 [1, 2] : vector<1x8x1xf32> to vector<1xf32>
      %51 = vector.shape_cast %50 : vector<1xf32> to vector<1x1x1xf32>
      %52 = vector.extract %51[0, 0, 0] : f32 from vector<1x1x1xf32>
      %cst_31 = arith.constant 1.000000e+00 : f32
      %cst_32 = arith.constant 0.000000e+00 : f32
      %53 = vector.broadcast %cst_31 : f32 to vector<8x1xf32>
      %54 = vector.broadcast %cst_32 : f32 to vector<8x1xf32>
      %55 = arith.select %46, %53, %54 : vector<8x1xi1>, vector<8x1xf32>
      %56 = vector.shape_cast %55 : vector<8x1xf32> to vector<1x8x1xf32>
      %cst_33 = arith.constant dense<0.000000e+00> : vector<1xf32>
      %57 = vector.multi_reduction <add>, %56, %cst_33 [1, 2] : vector<1x8x1xf32> to vector<1xf32>
      %58 = vector.shape_cast %57 : vector<1xf32> to vector<1x1x1xf32>
      %59 = vector.extract %58[0, 0, 0] : f32 from vector<1x1x1xf32>
      %60 = vector.broadcast %52 : f32 to vector<1x1x8x128xf32>
      %c0_34 = arith.constant 0 : index
      %c0_35 = arith.constant 0 : index
      %c0_36 = arith.constant 0 : index
      %c0_37 = arith.constant 0 : index
      %61 = vector.load %arg5[%c0_34, %c0_35, %c0_36, %c0_37] : memref<1x1x8x128xf32, #tpu.memory_space<vmem>>, vector<1x1x8x128xf32>
      tpu.vector_store %arg5[%c0_34, %c0_35, %c0_36, %c0_37], %60 {strides = array<i32>} : memref<1x1x8x128xf32, #tpu.memory_space<vmem>>, vector<1x1x8x128xf32>,
      %62 = vector.broadcast %59 : f32 to vector<1x1x8x128xf32>
      %c0_38 = arith.constant 0 : index
      %c0_39 = arith.constant 0 : index
      %c0_40 = arith.constant 0 : index
      %c0_41 = arith.constant 0 : index
      %63 = vector.load %arg6[%c0_38, %c0_39, %c0_40, %c0_41] : memref<1x1x8x128xf32, #tpu.memory_space<vmem>>, vector<1x1x8x128xf32>
      tpu.vector_store %arg6[%c0_38, %c0_39, %c0_40, %c0_41], %62 {strides = array<i32>} : memref<1x1x8x128xf32, #tpu.memory_space<vmem>>, vector<1x1x8x128xf32>,
    } else {
    }
    return
  }
  func.func @transform_0(%arg0: i32, %arg1: i32, %arg2: i32) -> (i32, i32, i32) {
    %c0_i32 = arith.constant 0 : i32
    return %arg0, %arg1, %arg2 : i32, i32, i32
  }
  func.func @transform_1(%arg0: i32, %arg1: i32, %arg2: i32) -> (i32, i32, i32) {
    %c0_i32 = arith.constant 0 : i32
    %c0_i32_0 = arith.constant 0 : i32
    return %arg0, %arg1, %c0_i32 : i32, i32, i32
  }
  func.func @transform_2(%arg0: i32, %arg1: i32, %arg2: i32) -> (i32, i32, i32, i32) {
    %c0_i32 = arith.constant 0 : i32
    %c0_i32_0 = arith.constant 0 : i32
    %c0_i32_1 = arith.constant 0 : i32
    return %arg0, %arg1, %c0_i32, %c0_i32_0 : i32, i32, i32, i32
  }
  func.func @transform_3(%arg0: i32, %arg1: i32, %arg2: i32) -> (i32, i32, i32, i32) {
    %c0_i32 = arith.constant 0 : i32
    %c0_i32_0 = arith.constant 0 : i32
    %c0_i32_1 = arith.constant 0 : i32
    return %arg0, %arg1, %c0_i32, %c0_i32_0 : i32, i32, i32, i32
  }
}

</mosaic_0001>

<bundles_post_ra>
// kernel: tpu_custom_call.1
= control target key start
LH: loop header
LB: loop body
LE: loop exit
PB: predicated region body
PF: predicated region fallthrough
CT: control target
= control target key end

     0   :  { %9 = vsyncpa [#allocation6], 0  ;;  %s879_s0 = inlined_call_operand.vmem [shape: f32[2,8,128], index: 0, kind: input, shape index: {}]   ;;  %s880_s1 = inlined_call_operand.vmem [shape: s32[2,8,1], index: 1, kind: input, shape index: {}]   ;;  %s881_s2 = inlined_call_operand.hbm [shape: f32[2,1,8,128], index: 2, kind: output, shape index: {0}]   ;;  %s882_s3 = inlined_call_operand.hbm [shape: f32[2,1,8,128], index: 3, kind: output, shape index: {1}]  }
   0x1   :  { %11 = vsyncpa [#allocation6 + $0x1], 0 }
   0x2   :  { %12 = vsyncpa [#allocation8], 0 }
   0x3   :  { %14 = vsyncpa [#allocation8 + $0x1], 0  ;;  %s721_s12 = smov 0   ;;  %s723_s13 = smov 0  }
   0x4   :  { %s725_s14 = smov 0   ;;  %s727_s15 = smov 0  }
   0x5   :  { %s729_s16 = smov 0   ;;  %s731_s17 = smov 0  }
   0x6 LB: > { %s494_s18 = sadd.s32 4294967295, %s694_s17   ;;  %s495_s19 = sadd.s32 4294967294, %s694_s17   ;;  %s694_s17 = sphi %s731_s17, %s20_s17   ;;  %s690_s16 = sphi %s729_s16, %s889_s16   ;;  %s686_s15 = sphi %s727_s15, %s888_s15   ;;  %s682_s14 = sphi %s725_s14, %s887_s14   ;;  %s678_s13 = sphi %s723_s13, %s886_s13   ;;  %s674_s12 = sphi %s721_s12, %s885_s12  }
   0x7   : > { %s39_s20 = sadd.s32 1, %s690_s16  ;;  %s106_s21 = sadd.s32 1, %s682_s14 }
   0x8   : > { %p41_p0 = scmp.ge.s32.totalorder %s39_s20, 2  ;;  %p116_p1 = scmp.ne.s32.totalorder %s682_s14, %s678_s13 }
   0x9   : > { %p117_p2 = scmp.eq.s32.totalorder %s494_s18, 1  ;;  %p122_p3 = scmp.ne.s32.totalorder %s678_s13, %s674_s12 }
   0xa   : > { %s891_s20 = smov (%p41_p0, %s39_s20), 0  ;;  %p123_p5 = scmp.eq.s32.totalorder %s495_s19, 1 }
   0xb   : > { %p761_p4 = por %p117_p2, %p116_p1  ;;  %s101_s23 = ssub.s32 %s690_s16, %s891_s20 }
   0xc   : > { %p498_p6 = scmp.ge.s32.totalorder %s694_s17, 1  ;;  %p104_p7 = scmp.eq.s32.totalorder %s101_s23, 0 }
   0xd   : > { %p768_p8 = por %p123_p5, %p122_p3  ;;  %p192_p9 = scmp.lt.s32.totalorder %s694_s17, 3 }
   0xe   : > { %s774_s25 = scalar_select %p104_p7, %s682_s14, %s106_s21  }
   0xf   : > { %p193_p10 = pnand %p498_p6, %p192_p9 }
  0x10   : > { %p233_p11 = scmp.lt.s32.totalorder (!%p193_p10), %s686_s15, 1  ;;  %vm254_vm0 = vcmask (!%p193_p10), 7168   ;;  %v696_v0 = vmov (!%p193_p10), -inf   ;;  %v697_v2 = vmov (!%p193_p10), 0   ;;  %v698_v4 = vmov (!%p193_p10), 0.0   ;;  %s795_s7 = sand.u32 (!%p193_p10), 1, %s678_s13  }
  0x11   : > { %196 = sbr.rel (%p193_p10) target bundleno = 730 (0x2da), region = 28  ;;  %255 = vst.msk [vmem:[#allocation2] sm:$0xff] (!%p193_p10), %vm254_vm0, %v696_v0  ;;  %576 = vset.pattern.permute.xlu0 (!%p193_p10), %v697_v2  ;;  %577 = vset.pattern.permute.xlu1 (!%p193_p10), %v697_v2  ;;  %256 = vst.msk [vmem:[#allocation3] sm:$0xff] (!%p193_p10), %vm254_vm0, %v698_v4  ;;  %v260_v12 = vlaneseq (!%p193_p10)  ;;  %s499_s8 = sshll.u32 (!%p193_p10), %s795_s7, 3 }
  0x12   : > { %257 = vst.msk [vmem:[#allocation4] sm:$0xff] (!%p193_p10), %vm254_vm0, %v698_v4  ;;  %s232_s9 = scalar_lea.vmem (!%p193_p10), [#allocation7], %s499_s8  ;;  %s225_s11 = scalar_lea.vmem (!%p193_p10), [#allocation5], %s499_s8 }
  0x13   : > { %v261_v13 = vand.u32 (!%p193_p10), 127, %v260_v12  ;;  %s369_s10 = sshll.u32 (!%p193_p10), %s232_s9, 4  ;;  %s355_s18 = sshll.u32 (!%p193_p10), %s225_s11, 4  ;;  %s799_s10 = int_to_ptr.vmem [resolvable:$true] %s369_s10  ;;  %s806_s18 = int_to_ptr.vmem [resolvable:$true] %s355_s18 }
  0x14   : > { %s505_s19 = sshll.u32 (!%p193_p10), %s686_s15, 7  ;;  %s584_s5 = scalar_lea.vmem (!%p193_p10), %s806_s18, 128 }
  0x15   : > { %s811_s4 = scalar_lea.hbm (!%p193_p10), %s882_s3, %s505_s19  ;;  %p585_p12 = scmp.ne.s32.totalorder (!%p193_p10), %s806_s18, %s584_s5 }
  0x17   : > { %p586_p13 = pnand (!%p193_p10), %p585_p12, %p761_p4 }
  0x18   : > { %s234_s26 = scalar_select %p233_p11, %s686_s15, 1  ;;  %v278_v5 = vld [vmem:[#allocation2] sm:$0xff]  ;;  %v290_v21 = vld [vmem:[#allocation3] sm:$0xff] }
  0x19   : > { %v269_v25 = vld [vmem:[#allocation4] sm:$0xff]  ;;  %s336_s15 = scalar_lea.sflag [#allocation6], %s795_s7  ;;  %p587_p0 = pneg %p586_p13 }
  0x1a   : > { %s501_s27 = sshll.u32 %s234_s26, 3  ;;  %s804_s26 = scalar_lea.hbm %s881_s2, %s505_s19 }
  0x1b   : > { %s242_s30 = scalar_lea.vmem %s879_s0, %s501_s27  ;;  %s249_s6 = scalar_lea.vmem %s880_s1, %s501_s27 }
  0x1c   : > { %v258_v1 = vld [vmem:[%s242_s30] sm:$0xff] }
  0x1d   : > { %276 = vmax.xlane.f32.xlu0 %v258_v1  ;;  %v259_v3 = vld [vmem:[%s249_s6] sm:$0xff]  ;;  %s699_s6 = smov [#allocation5]  }
  0x1e   : > { %266 = vperm.xlu1 %577, %v259_v3   ;;  %vm308_vm2 = vcmp.ne.s32.totalorder %v259_v3, 4294967196  ;;  %s588_s8 = sshll.u32 %s699_s6, 4  ;;  %s589_s8 = int_to_ptr.vmem [resolvable:$false] %s588_s8 }
  0x1f   : > { %v320_v17 = vsel %vm308_vm2, 1.0, %v698_v4  ;;  %s590_s21 = scalar_lea.vmem %s589_s8, 256  ;;  %p591_p1 = scmp.lt.s32.totalorder %s806_s18, %s589_s8 }
  0x20   : > { %v321_v18 = vsel %vm254_vm0, %v320_v17, 0.0  ;;  %p592_p2 = scmp.lt.s32.totalorder %s590_s21, %s584_s5 }
  0x22   : > { %p593_p3 = por %p592_p2, %p591_p1 }
  0x24   : > { %p594_p5 = pnand %p593_p3, %p587_p0 }
  0x9d   : > { %v267_v14 = vpop.permute.xlu1 %266 }
  0x9e   : > { %vm268_vm1 = vcmp.eq.s32.totalorder %v261_v13, %v267_v14 }
  0x9f   : > { %v270_v16 = vsel %vm268_vm1, %v258_v1, 0.0 }
  0xaa   : > { %v277_v6 = vpop.xlane.xlu0 %276 }
  0xab   : > { %v279_v7 = vmax.f32 %v278_v5, %v277_v6 }
  0xad   : > { %v291_v8 = vsub.f32 %v278_v5, %v279_v7  ;;  %297 = vst.msk [vmem:[#allocation2] sm:$0xff] %vm254_vm0, %v279_v7  ;;  %282 = vperm.xlu0 %576, %v279_v7  }
  0xaf   : > { %v292_v19 = vmul.f32 1.442695, %v291_v8 }
  0xb4   : > { %v301_v31 = vld [vmem:[#allocation2] sm:$0xff] }
  0xcc   : > { %322 = vadd.xlane.f32.xlu0 %v321_v18 }
 0x12c   : > { %v283_v9 = vpop.permute.xlu0 %282 }
 0x12d   : > { %v285_v10 = vsub.f32 %v258_v1, %v283_v9 }
 0x12f   : > { %v286_v11 = vmul.f32 1.442695, %v285_v10 }
 0x131   : > { %578 = vpow2.f32 %v286_v11 }
 0x132   : > { %580 = vpow2.f32 %v292_v19 }
 0x13b   : > { %v579_v15 = vpop.eup %578 }
 0x13c   : > { %288 = vadd.xlane.f32.xlu1 %v579_v15  ;;  %v581_v20 = vpop.eup %580 }
 0x13d   : > { %v294_v22 = vmul.f32 %v581_v20, %v290_v21 }
 0x140   : > { %271 = vadd.xlane.f32.xlu1 %v270_v16 }
 0x159   : > { %v323_v37 = vpop.xlane.xlu0 %322 }
 0x15a   : > { %v324_v38 = vrot.slane %v323_v37, 4 }
 0x15c   : > { %v325_v39 = vadd.f32 %v324_v38, %v323_v37 }
 0x15e   : > { %v326_v40 = vrot.slane %v325_v39, 2 }
 0x160   : > { %v327_v44 = vadd.f32 %v326_v40, %v325_v39 }
 0x162   : > { %v328_v47 = vrot.slane %v327_v44, 1 }
 0x164   : > { %v329_v50 = vadd.f32 %v328_v47, %v327_v44 }
 0x1c9   : > { %v289_v23 = vpop.xlane.xlu1 %288 }
 0x1ca   : > { %v295_v24 = vadd.f32 %v294_v22, %v289_v23 }
 0x1cc   : > { %296 = vst.msk [vmem:[#allocation3] sm:$0xff] %vm254_vm0, %v295_v24 }
 0x1cd   : > { %v272_v26 = vpop.xlane.xlu1 %271 }
 0x1ce   : > { %v273_v27 = vadd.f32 %v272_v26, %v269_v25 }
 0x1d0   : > { %275 = vst.msk [vmem:[#allocation4] sm:$0xff] %vm254_vm0, %v273_v27 }
 0x1d3   : > { %v302_v28 = vld [vmem:[#allocation3] sm:$0xff] }
 0x1d4   : > { %582 = vlog2.f32 %v302_v28 }
 0x1d7   : > { %v306_v32 = vld [vmem:[#allocation4] sm:$0xff] }
 0x1de   : > { %v583_v29 = vpop.eup %582 }
 0x1df   : > { %v304_v30 = vmul.f32 0.6931472, %v583_v29 }
 0x1e1   : > { %v305_v33 = vadd.f32 %v304_v30, %v301_v31 }
 0x1e3   : > { %v307_v34 = vsub.f32 %v305_v33, %v306_v32 }
 0x1e5   : > { %v309_v35 = vsel %vm308_vm2, %v307_v34, 0.0 }
 0x1e6   : > { %v310_v36 = vsel %vm254_vm0, %v309_v35, 0.0 }
 0x1e7   : > { %311 = vadd.xlane.f32.xlu1 %v310_v36 }
 0x274   : > { %v312_v41 = vpop.xlane.xlu1 %311 }
 0x275   : > { %v313_v42 = vrot.slane %v312_v41, 4 }
 0x277   : > { %v314_v43 = vadd.f32 %v313_v42, %v312_v41 }
 0x279   : > { %v315_v45 = vrot.slane %v314_v43, 2 }
 0x27b   : > { %v316_v46 = vadd.f32 %v315_v45, %v314_v43 }
 0x27d   : > { %v317_v48 = vrot.slane %v316_v46, 1 }
 0x27f   : > { %v318_v49 = vadd.f32 %v317_v48, %v316_v46 }
 0x281   : > { %509 = vpush %v318_v49 }
 0x282   : > { %511 = vpush %v329_v50 }
 0x2b2   : > { %s510_s27 = spop %509 }
 0x2b3   : > { %v331_v51 = vstv %s510_s27  ;;  %s512_s28 = spop %511 }
 0x2b4   : > { %332 = vst [vmem:[%s225_s11] sm:$0xff] %v331_v51  ;;  %v333_v52 = vstv %s512_s28 }
 0x2b5   : > { %334 = vst [vmem:[%s232_s9] sm:$0xff] %v333_v52 }
 0x2b6   : > { %597 = shalt.err (!%p594_p5)
}
 0x2b7   : > { %s598_s9 = scalar_lea.hbm %s804_s26, 128  ;;  %s602_s23 = scalar_lea.hbm %s881_s2, 256 }
 0x2b8   : > { %p599_p6 = scmp.ne.s32.totalorder %s804_s26, %s598_s9  ;;  %p603_p10 = scmp.lt.u32.totalorder %s804_s26, %s881_s2 }
 0x2b9   : > { %p604_p11 = scmp.lt.u32.totalorder %s602_s23, %s598_s9  ;;  %p606_p13 = scmp.lt.u32.totalorder %s598_s9, %s804_s26 }
 0x2ba   : > { %p600_p7 = pnand %p599_p6, %p761_p4 }
 0x2bb   : > { %p605_p12 = por %p604_p11, %p603_p10 }
 0x2bc   : > { %p601_p9 = pneg %p600_p7 }
 0x2bd   : > { %p607_p0 = por %p606_p13, %p605_p12 }
 0x2bf   : > { %p608_p1 = pnand %p607_p0, %p601_p9 }
 0x2c1   : > { %611 = shalt.err (!%p608_p1)
}
 0x2c2   : > { %513 = dma.vmem_to_hbm [thread:$0]  (%p761_p4), %s806_s18, 128, %s804_s26, %s336_s15  }
 0x2c3   : > { %s341_s29 = scalar_lea.sflag [#allocation8], %s795_s7  ;;  %s612_s30 = scalar_lea.vmem %s799_s10, 128 }
 0x2c4   : > { %p613_p2 = scmp.ne.s32.totalorder %s799_s10, %s612_s30  ;;  %s700_s5 = smov [#allocation7]  }
 0x2c5   : > { %s616_s6 = sshll.u32 %s700_s5, 4  ;;  %s617_s6 = int_to_ptr.vmem [resolvable:$false] %s616_s6 }
 0x2c6   : > { %p614_p3 = pnand %p613_p2, %p761_p4  ;;  %s618_s8 = scalar_lea.vmem %s617_s6, 256 }
 0x2c7   : > { %p619_p6 = scmp.lt.s32.totalorder %s799_s10, %s617_s6  ;;  %p620_p7 = scmp.lt.s32.totalorder %s618_s8, %s612_s30 }
 0x2c8   : > { %p615_p5 = pneg %p614_p3 }
 0x2c9   : > { %p621_p9 = por %p620_p7, %p619_p6 }
 0x2cb   : > { %p622_p10 = pnand %p621_p9, %p615_p5 }
 0x2cd   : > { %625 = shalt.err (!%p622_p10)
}
 0x2ce   : > { %s626_s7 = scalar_lea.hbm %s811_s4, 128  ;;  %s630_s15 = scalar_lea.hbm %s882_s3, 256 }
 0x2cf   : > { %p627_p11 = scmp.ne.s32.totalorder %s811_s4, %s626_s7  ;;  %p631_p0 = scmp.lt.u32.totalorder %s811_s4, %s882_s3 }
 0x2d0   : > { %p632_p1 = scmp.lt.u32.totalorder %s630_s15, %s626_s7  ;;  %p634_p3 = scmp.lt.u32.totalorder %s626_s7, %s811_s4 }
 0x2d1   : > { %p628_p12 = pnand %p627_p11, %p761_p4 }
 0x2d2   : > { %p633_p2 = por %p632_p1, %p631_p0 }
 0x2d3   : > { %p629_p13 = pneg %p628_p12 }
 0x2d4   : > { %p635_p5 = por %p634_p3, %p633_p2 }
 0x2d6   : > { %p636_p6 = pnand %p635_p5, %p629_p13 }
 0x2d8   : > { %639 = shalt.err (!%p636_p6)
}
 0x2d9   : > { %514 = dma.vmem_to_hbm [thread:$0]  (%p761_p4), %s799_s10, 128, %s811_s4, %s341_s29  }
 0x2da PF: > { %p524_p7 = scmp.ge.s32.totalorder %s694_s17, 2  ;;  %s381_s11 = sand.u32 1, %s674_s12  }
 0x2db   : > { %s382_s19 = scalar_lea.sflag [#allocation6], %s381_s11 }
 0x2dc   : > { %p518_p9 = pnand %p524_p7, %p768_p8 }
 0x2de   : > { %665 = dma.done.wait (!%p518_p9), %s382_s19, 128  }
 0x2df   : > { %667 = vsyncadd (!%p518_p9), %s382_s19, 4294967168  ;;  %s391_s23 = scalar_lea.sflag [#allocation8], %s381_s11 }
 0x2e0   : > { %669 = dma.done.wait (!%p518_p9), %s391_s23, 128  }
 0x2e1   : > { %671 = vsyncadd (!%p518_p9), %s391_s23, 4294967168  ;;  %s20_s17 = sadd.s32 1, %s694_s17   ;;  %s885_s12 = smov %s678_s13 }
 0x2e2   : > { %p17_p10 = scmp.ge.s32.totalorder %s20_s17, 4   ;;  %s886_s13 = smov %s682_s14 }
 0x2e3   : > { %s887_s14 = smov %s774_s25  ;;  %s888_s15 = smov %s690_s16 }
 0x2e4   : > { %s889_s16 = smov %s891_s20  ;;  %19 = sbr.rel (!%p17_p10) target bundleno = 6 (0x6), region = 91 }
 0x2eb   :  { %396 = vsyncpa [#allocation6], 1 }
 0x2ec   :  { %398 = vsyncpa [#allocation6 + $0x1], 1 }
 0x2ed   :  { %399 = vsyncpa [#allocation8], 1 }
 0x2ee   :  { %401 = vsyncpa [#allocation8 + $0x1], 1 }

</bundles_post_ra>
